<compile_context>
chip_gen: v7x
topology: tpu7x:2x2x1
jax: 0.10.0
libtpu: 0.0.40
codegen_flags: <defaults>
</compile_context>

<pallas_src>
import functools
import math

import jax
import jax.numpy as jnp
from jax.experimental import pallas as pl
from jax.experimental.pallas import tpu as pltpu


def actor_kernel(state_ref, goal_ref, noise_t_ref,
                 w1s_ref, w1g_ref, b1_ref,
                 w2_ref, b2_ref,
                 whead_t_ref, bhead_t_ref,
                 amean_t_ref, ascale_t_ref,
                 action_t_ref, logp_t_ref, ratio_t_ref,
                 *, action_dim, min_log_std, max_log_std, mostly_deterministic):
    w1s = w1s_ref[...]
    w1g = w1g_ref[...]
    w2 = w2_ref[...]
    wh = whead_t_ref[...]          # (2A, d2), pre-transposed in the wrapper
    mdt = w1s.dtype                # matmul operand dtype (weights pre-cast off-kernel)

    def cast(a):
        return a if a.dtype == mdt else a.astype(mdt)

    # Layer 1, fused concat: cat(state, goal) @ W1 == state @ W1s + goal @ W1g.
    h1 = (jnp.dot(cast(state_ref[...]), w1s, preferred_element_type=jnp.float32)
          + jnp.dot(cast(goal_ref[...]), w1g, preferred_element_type=jnp.float32)
          + b1_ref[...])
    h1 = jnp.maximum(h1, 0.0)

    h2 = jnp.maximum(
        jnp.dot(cast(h1), w2, preferred_element_type=jnp.float32) + b2_ref[...], 0.0)

    # Fused mu/log_std head, transposed (lane-dense):
    #   y_T[2A, tile] = Whead_T[2A, d2] . h2[tile, d2]^T   (contract over d2)
    y_t = jax.lax.dot_general(
        wh, cast(h2), (((1,), (1,)), ((), ())),
        preferred_element_type=jnp.float32) + bhead_t_ref[...]

    A = action_dim
    mu_t = y_t[:A, :]
    log_std_t = jnp.clip(y_t[A:, :], min_log_std, max_log_std)

    if mostly_deterministic:
        std_t = jnp.full_like(mu_t, 0.001)
        log_scale_t = jnp.full_like(mu_t, math.log(0.001))
    else:
        std_t = jnp.exp(log_std_t)
        log_scale_t = log_std_t   # log(exp(log_std)) == log_std (already clamped)

    noise_t = noise_t_ref[...]                 # (A, tile)
    sampled_t = mu_t + std_t * noise_t
    out_t = jnp.tanh(sampled_t)

    a_mean_t = amean_t_ref[...]                # (A, 1), lane-broadcast
    a_scale_t = ascale_t_ref[...]              # (A, 1)
    action_t_ref[...] = (a_mean_t + out_t * a_scale_t).astype(action_t_ref.dtype)

    # Normal(mu, std).log_prob(sampled); note (sampled - mu) / std == noise.
    lp_t = -0.5 * noise_t * noise_t - log_scale_t - 0.5 * math.log(2.0 * math.pi)
    tanh_corr_t = jnp.log(a_scale_t * (1.0 - out_t * out_t) + 1e-6)
    # Sum over the action axis = sublane axis -> cheap 2-sublane add, result (1, tile).
    logp_t_ref[...] = jnp.sum(lp_t - tanh_corr_t, axis=0,
                              keepdims=True).astype(logp_t_ref.dtype)

    upper = jnp.tanh(mu_t + std_t)
    lower = jnp.tanh(mu_t - std_t)
    ratio_t_ref[...] = ((upper - lower) * 0.5).astype(ratio_t_ref.dtype)


def _pick_batch_tile(B, max_tile=4096):
    """Batch tile for the grid.

    * Prefer exactly two grid steps (one per TensorCore on v7x) when each half is
      still a multiple of 128 (lane-dense transposed outputs) and fits the VMEM
      budget (<= max_tile rows, ~3 MiB/tile worst case).
    * Otherwise the largest multiple-of-128 tile <= max_tile dividing B.
    * Otherwise run the whole batch in a single step (small batches).
    """
    if B % 256 == 0 and B // 2 <= max_tile:
        return B // 2
    t = max_tile
    while t >= 128:
        if B % t == 0:
            return t
        t -= 128
    return B


def actor_forward(state, goal, noise, params, *,
                  min_log_std, max_log_std,
                  mostly_deterministic=False,
                  batch_tile=None, matmul_dtype=None):
    """Pallas implementation of Actor.forward(state, goal).

    `noise` is the standard-normal draw used by Normal.rsample (generated in the
    wrapper so results are deterministic / reference-checkable), shaped (B, A).
    Returns (action [B,A], log_prob [B,1], ratio [B,A]).
    """
    (w1s, w1g, b1, w2, b2, wmu, bmu, wls, bls, action_mean, action_scale) = params

    B, Ds = state.shape
    Dg = goal.shape[1]
    d1 = w1s.shape[1]
    d2 = w2.shape[1]
    A = wmu.shape[1]

    # Pack + pre-transpose the mu/log_std head once (wrapper-side, parameters only).
    whead_t = jnp.concatenate([wmu, wls], axis=1).T            # (2A, d2)
    bhead_t = jnp.concatenate([bmu.reshape(1, A), bls.reshape(1, A)], axis=1).T  # (2A, 1)
    amean_t = action_mean.reshape(1, A).T                      # (A, 1)
    ascale_t = action_scale.reshape(1, A).T                    # (A, 1)

    if matmul_dtype is not None:
        # Pre-cast MXU weight operands once; kernel only casts the activations.
        # (Keep f32 on v5e; bf16 only on v6e/v7x, and relax reference tolerances.)
        w1s = w1s.astype(matmul_dtype)
        w1g = w1g.astype(matmul_dtype)
        w2 = w2.astype(matmul_dtype)
        whead_t = whead_t.astype(matmul_dtype)

    # Lane-dense head layout: noise fed as (A, B).
    noise_t = noise.T

    if batch_tile is None:
        batch_tile = _pick_batch_tile(B)
    assert B % batch_tile == 0, "batch must be divisible by batch_tile"
    assert batch_tile == B or batch_tile % 128 == 0, \
        "batch_tile must be a multiple of 128 (lane-dense outputs) or the full batch"
    grid = (B // batch_tile,)

    # Weights / biases / bounds: full-extent blocks with constant index maps
    # -> fetched once, VMEM-resident across the batch grid.
    full = lambda shape: pl.BlockSpec(shape, lambda i: (0,) * len(shape))
    # Batch-tiled activations, batch-major (inputs).
    row = lambda d: pl.BlockSpec((batch_tile, d), lambda i: (i, 0))
    # Batch-tiled, lane-dense (transposed) arrays: noise / outputs.
    col = lambda d: pl.BlockSpec((d, batch_tile), lambda i: (0, i))

    kernel = functools.partial(
        actor_kernel,
        action_dim=int(A),
        min_log_std=float(min_log_std),
        max_log_std=float(max_log_std),
        mostly_deterministic=bool(mostly_deterministic),
    )

    out_dtype = state.dtype
    action_t, logp_t, ratio_t = pl.pallas_call(
        kernel,
        out_shape=(
            jax.ShapeDtypeStruct((A, B), out_dtype),   # action (transposed)
            jax.ShapeDtypeStruct((1, B), out_dtype),   # log_prob (transposed)
            jax.ShapeDtypeStruct((A, B), out_dtype),   # ratio (transposed)
        ),
        grid_spec=pltpu.PrefetchScalarGridSpec(
            num_scalar_prefetch=0,
            grid=grid,
            in_specs=[
                row(Ds),              # state
                row(Dg),              # goal
                col(A),               # noise (A, B)
                full((Ds, d1)),       # W1 (state rows)
                full((Dg, d1)),       # W1 (goal rows)
                full((1, d1)),        # b1
                full((d1, d2)),       # W2
                full((1, d2)),        # b2
                full((2 * A, d2)),    # [Wmu | Wls]^T
                full((2 * A, 1)),     # [bmu | bls]^T
                full((A, 1)),         # action_mean^T
                full((A, 1)),         # action_scale^T
            ],
            out_specs=[
                col(A),               # action^T
                col(1),               # log_prob^T
                col(A),               # ratio^T
            ],
        ),
        compiler_params=pltpu.CompilerParams(
            dimension_semantics=("parallel",),
            vmem_limit_bytes=32 * 1024 * 1024,   # documents the budget; ample on all gens
        ),
    )(state, goal, noise_t,
      w1s, w1g, b1, w2, b2, whead_t, bhead_t, amean_t, ascale_t)

    # Tiny (A, B)/(1, B) transposes back to the module's (B, A)/(B, 1) API.
    return action_t.T, logp_t.T, ratio_t.T


def init_linear(key, in_dim, out_dim, dtype=jnp.float32):
    # PyTorch-style nn.Linear init: U(-1/sqrt(in), 1/sqrt(in)); weight stored
    # pre-transposed as (in, out) so the kernel computes x @ W.
    kw, kb = jax.random.split(key)
    bound = 1.0 / float(math.sqrt(in_dim))
    w = jax.random.uniform(kw, (in_dim, out_dim), dtype, -bound, bound)
    b = jax.random.uniform(kb, (1, out_dim), dtype, -bound, bound)
    return w, b


if __name__ == "__main__":
    # Small config consistent with the module's __init__.
    img_embed_dim = 16
    num_frames = 2
    actor_dim1 = 64
    actor_dim2 = 32
    action_dim = 2
    batch = 256            # exercises the tiled path: 2 grid steps of 128 rows
    min_log_std, max_log_std = -5.0, 2.0
    mostly_deterministic = False

    Ds = img_embed_dim * num_frames        # state features   = 32
    Dg = img_embed_dim                     # goal features    = 16
    in_dim = Ds + Dg                       # fc_1 input dim   = 48

    key = jax.random.PRNGKey(0)
    (k_state, k_goal, k_noise, k1, k2, k3, k4) = jax.random.split(key, 7)

    state = jax.random.normal(k_state, (batch, Ds), jnp.float32)
    goal = jax.random.normal(k_goal, (batch, Dg), jnp.float32)
    noise = jax.random.normal(k_noise, (batch, action_dim), jnp.float32)

    w1, b1 = init_linear(k1, in_dim, actor_dim1)
    w1s, w1g = w1[:Ds], w1[Ds:]            # row-split of fc_1 weight (fused concat)
    w2, b2 = init_linear(k2, actor_dim1, actor_dim2)
    wmu, bmu = init_linear(k3, actor_dim2, action_dim)
    wls, bls = init_linear(k4, actor_dim2, action_dim)

    action_low = jnp.full((1, action_dim), -2.0, jnp.float32)
    action_high = jnp.full((1, action_dim), 1.0, jnp.float32)
    action_mean = (action_low + action_high) / 2.0
    action_scale = (action_high - action_low) / 2.0

    params = (w1s, w1g, b1, w2, b2, wmu, bmu, wls, bls, action_mean, action_scale)

    action, log_prob, ratio = actor_forward(
        state, goal, noise, params,
        min_log_std=min_log_std, max_log_std=max_log_std,
        mostly_deterministic=mostly_deterministic,
        matmul_dtype=None)   # keep f32 so the 1e-4 reference check below is valid
    action, log_prob, ratio = jax.block_until_ready((action, log_prob, ratio))

    # Pure-JAX reference of the same forward pass (same noise draw).
    x1 = jnp.concatenate([state, goal], axis=-1)
    h1 = jnp.maximum(x1 @ w1 + b1, 0.0)
    h2 = jnp.maximum(h1 @ w2 + b2, 0.0)
    mu = h2 @ wmu + bmu
    log_std = jnp.clip(h2 @ wls + bls, min_log_std, max_log_std)
    if mostly_deterministic:
        std = jnp.full_like(mu, 0.001)
    else:
        std = jnp.exp(log_std)
    sampled = mu + std * noise
    out = jnp.tanh(sampled)
    action_r = action_mean + out * action_scale
    lp = (-0.5 * ((sampled - mu) / std) ** 2 - jnp.log(std)
          - 0.5 * jnp.log(2.0 * jnp.pi))
    tanh_corr = jnp.log(action_scale * (1.0 - out ** 2) + 1e-6)
    log_prob_r = jnp.sum(lp - tanh_corr, axis=-1, keepdims=True)
    ratio_r = (jnp.tanh(mu + std) - jnp.tanh(mu - std)) / 2.0

    assert action.shape == (batch, action_dim)
    assert log_prob.shape == (batch, 1)
    assert ratio.shape == (batch, action_dim)
    assert jnp.allclose(action, action_r, atol=1e-4, rtol=1e-4)
    assert jnp.allclose(log_prob, log_prob_r, atol=1e-4, rtol=1e-4)
    assert jnp.allclose(ratio, ratio_r, atol=1e-4, rtol=1e-4)

    print("KERNEL_OK")
</pallas_src>

<mosaic_0001>
module attributes {stable_mosaic.version = 11 : i64} {
  func.func @actor_kernel(%arg0: i32, %arg1: memref<128x32xf32, #tpu.memory_space<vmem>>, %arg2: memref<128x16xf32, #tpu.memory_space<vmem>>, %arg3: memref<2x128xf32, #tpu.memory_space<vmem>>, %arg4: memref<32x64xf32, #tpu.memory_space<vmem>>, %arg5: memref<16x64xf32, #tpu.memory_space<vmem>>, %arg6: memref<1x64xf32, #tpu.memory_space<vmem>>, %arg7: memref<64x32xf32, #tpu.memory_space<vmem>>, %arg8: memref<1x32xf32, #tpu.memory_space<vmem>>, %arg9: memref<4x32xf32, #tpu.memory_space<vmem>>, %arg10: memref<4x1xf32, #tpu.memory_space<vmem>>, %arg11: memref<2x1xf32, #tpu.memory_space<vmem>>, %arg12: memref<2x1xf32, #tpu.memory_space<vmem>>, %arg13: memref<2x128xf32, #tpu.memory_space<vmem>>, %arg14: memref<1x128xf32, #tpu.memory_space<vmem>>, %arg15: memref<2x128xf32, #tpu.memory_space<vmem>>) attributes {dimension_semantics = [#tpu.dimension_semantics<parallel>], iteration_bounds = array<i64: 2>, scalar_prefetch = 0 : i64, scratch_operands = 0 : i64, tpu.core_type = #tpu.core_type<tc>, window_params = [{transform_indices = @transform_0, window_bounds = array<i64: 128, 32>}, {transform_indices = @transform_1, window_bounds = array<i64: 128, 16>}, {transform_indices = @transform_2, window_bounds = array<i64: 2, 128>}, {pipeline_mode = #tpu.pipeline_mode<synchronous>, transform_indices = @transform_3, window_bounds = array<i64: 32, 64>}, {pipeline_mode = #tpu.pipeline_mode<synchronous>, transform_indices = @transform_4, window_bounds = array<i64: 16, 64>}, {pipeline_mode = #tpu.pipeline_mode<synchronous>, transform_indices = @transform_5, window_bounds = array<i64: 1, 64>}, {pipeline_mode = #tpu.pipeline_mode<synchronous>, transform_indices = @transform_6, window_bounds = array<i64: 64, 32>}, {pipeline_mode = #tpu.pipeline_mode<synchronous>, transform_indices = @transform_7, window_bounds = array<i64: 1, 32>}, {pipeline_mode = #tpu.pipeline_mode<synchronous>, transform_indices = @transform_8, window_bounds = array<i64: 4, 32>}, {pipeline_mode = #tpu.pipeline_mode<synchronous>, transform_indices = @transform_9, window_bounds = array<i64: 4, 1>}, {pipeline_mode = #tpu.pipeline_mode<synchronous>, transform_indices = @transform_10, window_bounds = array<i64: 2, 1>}, {pipeline_mode = #tpu.pipeline_mode<synchronous>, transform_indices = @transform_11, window_bounds = array<i64: 2, 1>}, {transform_indices = @transform_12, window_bounds = array<i64: 2, 128>}, {transform_indices = @transform_13, window_bounds = array<i64: 1, 128>}, {transform_indices = @transform_14, window_bounds = array<i64: 2, 128>}]} {
    %c0 = arith.constant 0 : index
    %c0_0 = arith.constant 0 : index
    %0 = vector.load %arg4[%c0, %c0_0] : memref<32x64xf32, #tpu.memory_space<vmem>>, vector<32x64xf32>
    %c0_1 = arith.constant 0 : index
    %c0_2 = arith.constant 0 : index
    %1 = vector.load %arg5[%c0_1, %c0_2] : memref<16x64xf32, #tpu.memory_space<vmem>>, vector<16x64xf32>
    %c0_3 = arith.constant 0 : index
    %c0_4 = arith.constant 0 : index
    %2 = vector.load %arg7[%c0_3, %c0_4] : memref<64x32xf32, #tpu.memory_space<vmem>>, vector<64x32xf32>
    %c0_5 = arith.constant 0 : index
    %c0_6 = arith.constant 0 : index
    %3 = vector.load %arg9[%c0_5, %c0_6] : memref<4x32xf32, #tpu.memory_space<vmem>>, vector<4x32xf32>
    %c0_7 = arith.constant 0 : index
    %c0_8 = arith.constant 0 : index
    %4 = vector.load %arg1[%c0_7, %c0_8] : memref<128x32xf32, #tpu.memory_space<vmem>>, vector<128x32xf32>
    %cst = arith.constant dense<0.000000e+00> : vector<128x64xf32>
    %5 = tpu.matmul %4, %0, %cst {dimension_numbers = #tpu.dot_dimension_numbers<[1], [0], [0], [1], [0, 0, 1, 1], [], []>} : vector<128x32xf32>, vector<32x64xf32>, vector<128x64xf32> -> vector<128x64xf32>
    %c0_9 = arith.constant 0 : index
    %c0_10 = arith.constant 0 : index
    %6 = vector.load %arg2[%c0_9, %c0_10] : memref<128x16xf32, #tpu.memory_space<vmem>>, vector<128x16xf32>
    %cst_11 = arith.constant dense<0.000000e+00> : vector<128x64xf32>
    %7 = tpu.matmul %6, %1, %cst_11 {dimension_numbers = #tpu.dot_dimension_numbers<[1], [0], [0], [1], [0, 0, 1, 1], [], []>} : vector<128x16xf32>, vector<16x64xf32>, vector<128x64xf32> -> vector<128x64xf32>
    %8 = arith.addf %5, %7 : vector<128x64xf32>
    %c0_12 = arith.constant 0 : index
    %c0_13 = arith.constant 0 : index
    %9 = vector.load %arg6[%c0_12, %c0_13] : memref<1x64xf32, #tpu.memory_space<vmem>>, vector<1x64xf32>
    %10 = vector.broadcast %9 : vector<1x64xf32> to vector<128x64xf32>
    %11 = arith.addf %8, %10 : vector<128x64xf32>
    %cst_14 = arith.constant 0.000000e+00 : f32
    %12 = vector.broadcast %cst_14 : f32 to vector<128x64xf32>
    %13 = arith.maximumf %11, %12 : vector<128x64xf32>
    %cst_15 = arith.constant dense<0.000000e+00> : vector<128x32xf32>
    %14 = tpu.matmul %13, %2, %cst_15 {dimension_numbers = #tpu.dot_dimension_numbers<[1], [0], [0], [1], [0, 0, 1, 1], [], []>} : vector<128x64xf32>, vector<64x32xf32>, vector<128x32xf32> -> vector<128x32xf32>
    %c0_16 = arith.constant 0 : index
    %c0_17 = arith.constant 0 : index
    %15 = vector.load %arg8[%c0_16, %c0_17] : memref<1x32xf32, #tpu.memory_space<vmem>>, vector<1x32xf32>
    %16 = vector.broadcast %15 : vector<1x32xf32> to vector<128x32xf32>
    %17 = arith.addf %14, %16 : vector<128x32xf32>
    %cst_18 = arith.constant 0.000000e+00 : f32
    %18 = vector.broadcast %cst_18 : f32 to vector<128x32xf32>
    %19 = arith.maximumf %17, %18 : vector<128x32xf32>
    %cst_19 = arith.constant dense<0.000000e+00> : vector<4x128xf32>
    %20 = tpu.matmul %3, %19, %cst_19 {dimension_numbers = #tpu.dot_dimension_numbers<[1], [1], [0], [0], [0, 0, 1, 0], [], []>} : vector<4x32xf32>, vector<128x32xf32>, vector<4x128xf32> -> vector<4x128xf32>
    %c0_20 = arith.constant 0 : index
    %c0_21 = arith.constant 0 : index
    %21 = vector.load %arg10[%c0_20, %c0_21] : memref<4x1xf32, #tpu.memory_space<vmem>>, vector<4x1xf32>
    %22 = vector.broadcast %21 : vector<4x1xf32> to vector<4x128xf32>
    %23 = arith.addf %20, %22 : vector<4x128xf32>
    %24 = vector.extract_strided_slice %23 {offsets = [0, 0], sizes = [2, 128], strides = [1, 1]} : vector<4x128xf32> to vector<2x128xf32>
    %25 = vector.extract_strided_slice %23 {offsets = [2, 0], sizes = [2, 128], strides = [1, 1]} : vector<4x128xf32> to vector<2x128xf32>
    %cst_22 = arith.constant -5.000000e+00 : f32
    %cst_23 = arith.constant 2.000000e+00 : f32
    %26 = vector.broadcast %cst_22 : f32 to vector<2x128xf32>
    %27 = arith.maximumf %26, %25 : vector<2x128xf32>
    %28 = vector.broadcast %cst_23 : f32 to vector<2x128xf32>
    %29 = arith.minimumf %28, %27 : vector<2x128xf32>
    %30 = math.exp %29 : vector<2x128xf32>
    %c0_24 = arith.constant 0 : index
    %c0_25 = arith.constant 0 : index
    %31 = vector.load %arg3[%c0_24, %c0_25] : memref<2x128xf32, #tpu.memory_space<vmem>>, vector<2x128xf32>
    %32 = arith.mulf %30, %31 : vector<2x128xf32>
    %33 = arith.addf %24, %32 : vector<2x128xf32>
    %34 = math.tanh %33 : vector<2x128xf32>
    %c0_26 = arith.constant 0 : index
    %c0_27 = arith.constant 0 : index
    %35 = vector.load %arg11[%c0_26, %c0_27] : memref<2x1xf32, #tpu.memory_space<vmem>>, vector<2x1xf32>
    %c0_28 = arith.constant 0 : index
    %c0_29 = arith.constant 0 : index
    %36 = vector.load %arg12[%c0_28, %c0_29] : memref<2x1xf32, #tpu.memory_space<vmem>>, vector<2x1xf32>
    %37 = vector.broadcast %36 : vector<2x1xf32> to vector<2x128xf32>
    %38 = arith.mulf %34, %37 : vector<2x128xf32>
    %39 = vector.broadcast %35 : vector<2x1xf32> to vector<2x128xf32>
    %40 = arith.addf %39, %38 : vector<2x128xf32>
    %c0_30 = arith.constant 0 : index
    %c0_31 = arith.constant 0 : index
    %41 = vector.load %arg13[%c0_30, %c0_31] : memref<2x128xf32, #tpu.memory_space<vmem>>, vector<2x128xf32>
    tpu.vector_store %arg13[%c0_30, %c0_31], %40 {strides = array<i32>} : memref<2x128xf32, #tpu.memory_space<vmem>>, vector<2x128xf32>,
    %cst_32 = arith.constant -5.000000e-01 : f32
    %42 = vector.broadcast %cst_32 : f32 to vector<2x128xf32>
    %43 = arith.mulf %42, %31 : vector<2x128xf32>
    %44 = arith.mulf %43, %31 : vector<2x128xf32>
    %45 = arith.subf %44, %29 : vector<2x128xf32>
    %cst_33 = arith.constant 0.918938517 : f32
    %46 = vector.broadcast %cst_33 : f32 to vector<2x128xf32>
    %47 = arith.subf %45, %46 : vector<2x128xf32>
    %48 = arith.mulf %34, %34 : vector<2x128xf32>
    %cst_34 = arith.constant 1.000000e+00 : f32
    %49 = vector.broadcast %cst_34 : f32 to vector<2x128xf32>
    %50 = arith.subf %49, %48 : vector<2x128xf32>
    %51 = vector.broadcast %36 : vector<2x1xf32> to vector<2x128xf32>
    %52 = arith.mulf %51, %50 : vector<2x128xf32>
    %cst_35 = arith.constant 9.99999997E-7 : f32
    %53 = vector.broadcast %cst_35 : f32 to vector<2x128xf32>
    %54 = arith.addf %52, %53 : vector<2x128xf32>
    %55 = math.log %54 : vector<2x128xf32>
    %56 = arith.subf %47, %55 : vector<2x128xf32>
    %cst_36 = arith.constant dense<0.000000e+00> : vector<128xf32>
    %57 = vector.multi_reduction <add>, %56, %cst_36 [0] : vector<2x128xf32> to vector<128xf32>
    %58 = vector.shape_cast %57 : vector<128xf32> to vector<1x128xf32>
    %c0_37 = arith.constant 0 : index
    %c0_38 = arith.constant 0 : index
    %59 = vector.load %arg14[%c0_37, %c0_38] : memref<1x128xf32, #tpu.memory_space<vmem>>, vector<1x128xf32>
    tpu.vector_store %arg14[%c0_37, %c0_38], %58 {strides = array<i32>} : memref<1x128xf32, #tpu.memory_space<vmem>>, vector<1x128xf32>,
    %60 = arith.addf %24, %30 : vector<2x128xf32>
    %61 = math.tanh %60 : vector<2x128xf32>
    %62 = arith.subf %24, %30 : vector<2x128xf32>
    %63 = math.tanh %62 : vector<2x128xf32>
    %64 = arith.subf %61, %63 : vector<2x128xf32>
    %cst_39 = arith.constant 5.000000e-01 : f32
    %65 = vector.broadcast %cst_39 : f32 to vector<2x128xf32>
    %66 = arith.mulf %64, %65 : vector<2x128xf32>
    %c0_40 = arith.constant 0 : index
    %c0_41 = arith.constant 0 : index
    %67 = vector.load %arg15[%c0_40, %c0_41] : memref<2x128xf32, #tpu.memory_space<vmem>>, vector<2x128xf32>
    tpu.vector_store %arg15[%c0_40, %c0_41], %66 {strides = array<i32>} : memref<2x128xf32, #tpu.memory_space<vmem>>, vector<2x128xf32>,
    return
  }
  func.func @transform_0(%arg0: i32) -> (i32, i32) {
    %c0_i32 = arith.constant 0 : i32
    %c0_i32_0 = arith.constant 0 : i32
    return %arg0, %c0_i32 : i32, i32
  }
  func.func @transform_1(%arg0: i32) -> (i32, i32) {
    %c0_i32 = arith.constant 0 : i32
    %c0_i32_0 = arith.constant 0 : i32
    return %arg0, %c0_i32 : i32, i32
  }
  func.func @transform_2(%arg0: i32) -> (i32, i32) {
    %c0_i32 = arith.constant 0 : i32
    %c0_i32_0 = arith.constant 0 : i32
    return %c0_i32, %arg0 : i32, i32
  }
  func.func @transform_3(%arg0: i32) -> (i32, i32) {
    %c0_i32 = arith.constant 0 : i32
    %c0_i32_0 = arith.constant 0 : i32
    %c0_i32_1 = arith.constant 0 : i32
    return %c0_i32, %c0_i32_0 : i32, i32
  }
  func.func @transform_4(%arg0: i32) -> (i32, i32) {
    %c0_i32 = arith.constant 0 : i32
    %c0_i32_0 = arith.constant 0 : i32
    %c0_i32_1 = arith.constant 0 : i32
    return %c0_i32, %c0_i32_0 : i32, i32
  }
  func.func @transform_5(%arg0: i32) -> (i32, i32) {
    %c0_i32 = arith.constant 0 : i32
    %c0_i32_0 = arith.constant 0 : i32
    %c0_i32_1 = arith.constant 0 : i32
    return %c0_i32, %c0_i32_0 : i32, i32
  }
  func.func @transform_6(%arg0: i32) -> (i32, i32) {
    %c0_i32 = arith.constant 0 : i32
    %c0_i32_0 = arith.constant 0 : i32
    %c0_i32_1 = arith.constant 0 : i32
    return %c0_i32, %c0_i32_0 : i32, i32
  }
  func.func @transform_7(%arg0: i32) -> (i32, i32) {
    %c0_i32 = arith.constant 0 : i32
    %c0_i32_0 = arith.constant 0 : i32
    %c0_i32_1 = arith.constant 0 : i32
    return %c0_i32, %c0_i32_0 : i32, i32
  }
  func.func @transform_8(%arg0: i32) -> (i32, i32) {
    %c0_i32 = arith.constant 0 : i32
    %c0_i32_0 = arith.constant 0 : i32
    %c0_i32_1 = arith.constant 0 : i32
    return %c0_i32, %c0_i32_0 : i32, i32
  }
  func.func @transform_9(%arg0: i32) -> (i32, i32) {
    %c0_i32 = arith.constant 0 : i32
    %c0_i32_0 = arith.constant 0 : i32
    %c0_i32_1 = arith.constant 0 : i32
    return %c0_i32, %c0_i32_0 : i32, i32
  }
  func.func @transform_10(%arg0: i32) -> (i32, i32) {
    %c0_i32 = arith.constant 0 : i32
    %c0_i32_0 = arith.constant 0 : i32
    %c0_i32_1 = arith.constant 0 : i32
    return %c0_i32, %c0_i32_0 : i32, i32
  }
  func.func @transform_11(%arg0: i32) -> (i32, i32) {
    %c0_i32 = arith.constant 0 : i32
    %c0_i32_0 = arith.constant 0 : i32
    %c0_i32_1 = arith.constant 0 : i32
    return %c0_i32, %c0_i32_0 : i32, i32
  }
  func.func @transform_12(%arg0: i32) -> (i32, i32) {
    %c0_i32 = arith.constant 0 : i32
    %c0_i32_0 = arith.constant 0 : i32
    return %c0_i32, %arg0 : i32, i32
  }
  func.func @transform_13(%arg0: i32) -> (i32, i32) {
    %c0_i32 = arith.constant 0 : i32
    %c0_i32_0 = arith.constant 0 : i32
    return %c0_i32, %arg0 : i32, i32
  }
  func.func @transform_14(%arg0: i32) -> (i32, i32) {
    %c0_i32 = arith.constant 0 : i32
    %c0_i32_0 = arith.constant 0 : i32
    return %c0_i32, %arg0 : i32, i32
  }
}

</mosaic_0001>

<bundles_post_ra>
// kernel: tpu_custom_call.1
= control target key start
LH: loop header
LB: loop body
LE: loop exit
PB: predicated region body
PF: predicated region fallthrough
CT: control target
= control target key end

     0   :  { %s2621_s0 = inlined_call_operand.vmem [shape: f32[256,32], index: 0, kind: input, shape index: {}]   ;;  %s2622_s1 = inlined_call_operand.vmem [shape: f32[256,16], index: 1, kind: input, shape index: {}]   ;;  %s2623_s2 = inlined_call_operand.vmem [shape: f32[2,256], index: 2, kind: input, shape index: {}]   ;;  %s2624_s3 = inlined_call_operand.vmem [shape: f32[32,64], index: 3, kind: input, shape index: {}]   ;;  %s2625_s4 = inlined_call_operand.vmem [shape: f32[16,64], index: 4, kind: input, shape index: {}]   ;;  %s2626_s5 = inlined_call_operand.vmem [shape: f32[1,64], index: 5, kind: input, shape index: {}]   ;;  %s2627_s6 = inlined_call_operand.vmem [shape: f32[64,32], index: 6, kind: input, shape index: {}]   ;;  %s2628_s7 = inlined_call_operand.vmem [shape: f32[1,32], index: 7, kind: input, shape index: {}]   ;;  %s2629_s8 = inlined_call_operand.vmem [shape: f32[4,32], index: 8, kind: input, shape index: {}]   ;;  %s2630_s9 = inlined_call_operand.vmem [shape: f32[4,1], index: 9, kind: input, shape index: {}]   ;;  %s2631_s10 = inlined_call_operand.vmem [shape: f32[2,1], index: 10, kind: input, shape index: {}]   ;;  %s2632_s11 = inlined_call_operand.vmem [shape: f32[2,1], index: 11, kind: input, shape index: {}]   ;;  %s2633_s12 = inlined_call_operand.hbm [shape: f32[2,256], index: 12, kind: output, shape index: {0}]   ;;  %s2634_s13 = inlined_call_operand.hbm [shape: f32[1,256], index: 13, kind: output, shape index: {1}]   ;;  %s2635_s14 = inlined_call_operand.hbm [shape: f32[2,256], index: 14, kind: output, shape index: {2}]  }
   0x1   :  { %2642 = sst [smem:[#allocation13_spill]] %s2621_s0 }
   0x2   :  { %2643 = sst [smem:[#allocation14_spill]] %s2622_s1 }
   0x3   :  { %2644 = sst [smem:[#allocation15_spill]] %s2625_s4 }
   0x4   :  { %20 = vsyncpa [#allocation3], 0 }
   0x5   :  { %22 = vsyncpa [#allocation3 + $0x1], 0 }
   0x6   :  { %23 = vsyncpa [#allocation5], 0 }
   0x7   :  { %25 = vsyncpa [#allocation5 + $0x1], 0  ;;  %s2240_s29 = smov 0   ;;  %s2242_s30 = smov 0  }
   0x8   :  { %s2244_s15 = smov 0   ;;  %s2246_s16 = smov 0  }
   0x9 LB: > { %2645 = sst [smem:[#allocation9_spill]] %s2152_s15  ;;  %s2261_s17 = sadd.s32 4294967295, %s2156_s16   ;;  %s2156_s16 = sphi %s2246_s16, %s2659_s16   ;;  %s2152_s15 = sphi %s2244_s15, %s2661_s15   ;;  %s2148_s30 = sphi %s2242_s30, %s2663_s30   ;;  %s2144_s29 = sphi %s2240_s29, %s2662_s29  }
   0xa   : > { %s2636_s18 = sadd.s32 4294967294, %s2156_s16   ;;  %s2265_s19 = sadd.s32 1, %s2156_s16  }
   0xb   : > { %2646 = sst [smem:[#allocation10_spill]] %s2265_s19  ;;  %s305_s20 = sadd.s32 1, %s2152_s15 }
   0xc   : > { %s302_s21 = ssub.s32 %s2156_s16, %s2265_s19  ;;  %p315_p0 = scmp.ne.s32.totalorder %s2152_s15, %s2148_s30 }
   0xd   : > { %p303_p1 = scmp.eq.s32.totalorder %s302_s21, 0  ;;  %p316_p2 = scmp.eq.s32.totalorder %s2261_s17, 1 }
   0xe   : > { %p321_p3 = scmp.ne.s32.totalorder %s2148_s30, %s2144_s29  ;;  %p322_p4 = scmp.eq.s32.totalorder %s2636_s18, 1 }
   0xf   : > { %s2278_s22 = scalar_select %p303_p1, %s2152_s15, %s305_s20  }
  0x10   : > { %p2280_p5 = por %p316_p2, %p315_p0  ;;  %p2284_p6 = por %p322_p4, %p321_p3 }
  0x11   : > { %2647 = sst [smem:[#allocation11_spill]] %s2278_s22  ;;  %p1596_p7 = scmp.ge.s32.totalorder %s2156_s16, 1 }
  0x12   : > { %s2649_s24 = scalar_select %p2284_p6, 1, 0 }
  0x13   : > { %p444_p8 = scmp.lt.s32.totalorder %s2156_s16, 3 }
  0x14   : > { %2650 = sst [smem:[#allocation12_spill]] %s2649_s24 }
  0x15   : > { %p445_p9 = pnand %p1596_p7, %p444_p8 }
  0x16   : > { %s2651_s4 = sld [smem:[#allocation15_spill]] (!%p445_p9)  ;;  %s2297_s20 = sshll.u32 (!%p445_p9), %s2261_s17, 4  ;;  %v524_v2 = vld [vmem:[%s2624_s3] sm:$0xff] (!%p445_p9)  ;;  %v525_v4 = vld [vmem:[%s2624_s3 + $0x8] sm:$0xff] (!%p445_p9)  ;;  %v532_v8 = vld [vmem:[%s2627_s6 + $0x10] sm:$0xff] (!%p445_p9)  ;;  %vm571_vm0 = vcmask (!%p445_p9), 130048  }
  0x17   : > { %448 = sbr.rel (%p445_p9) target bundleno = 899 (0x383), region = 68  ;;  %p509_p10 = scmp.lt.s32.totalorder (!%p445_p9), %s2297_s20, 31  ;;  %v1897_v5 = vpack.c.bf16 (!%p445_p9), %v525_v4, %v524_v2  ;;  %v530_v6 = vld [vmem:[%s2627_s6] sm:$0xff] (!%p445_p9)  ;;  %v531_v7 = vld [vmem:[%s2627_s6 + $0x8] sm:$0xff] (!%p445_p9)  ;;  %v533_v10 = vld [vmem:[%s2627_s6 + $0x18] sm:$0xff] (!%p445_p9)  ;;  %vm765_vm1 = vcmask (!%p445_p9), 261120  }
  0x18   : > { %v1905_v9 = vpack.c.bf16 (!%p445_p9), %v531_v7, %v530_v6  ;;  %v526_v11 = vld [vmem:[%s2624_s3 + $0x10] sm:$0xff] (!%p445_p9)  ;;  %v527_v12 = vld [vmem:[%s2624_s3 + $0x18] sm:$0xff] (!%p445_p9)  ;;  %v1909_v13 = vpack.c.bf16 (!%p445_p9), %v533_v10, %v532_v8  ;;  %v534_v14 = vld [vmem:[%s2627_s6 + $0x20] sm:$0xff] (!%p445_p9)  ;;  %s2652_s1 = sld [smem:[#allocation14_spill]] (!%p445_p9)  ;;  %s2653_s0 = sld [smem:[#allocation13_spill]] (!%p445_p9)  ;;  %vm1005_vm2 = vcmask (!%p445_p9), 523264  }
  0x19   : > { %v535_v15 = vld [vmem:[%s2627_s6 + $0x28] sm:$0xff] (!%p445_p9)  ;;  %v1901_v19 = vpack.c.bf16 (!%p445_p9), %v527_v12, %v526_v11  ;;  %v536_v50 = vld [vmem:[%s2627_s6 + $0x30] sm:$0xff] (!%p445_p9)  ;;  %v537_v51 = vld [vmem:[%s2627_s6 + $0x38] sm:$0xff] (!%p445_p9)  ;;  %vm2159_vm3 = vmmov (!%p445_p9), 0   ;;  %p520_p11 = scmp.lt.s32.totalorder (!%p445_p9), %s2261_s17, 1  ;;  %s2162_s15 = smov (!%p445_p9), [#allocation2]  }
  0x1a   : > { %1906 = vmatprep.subr.bf16.mxu1 (!%p445_p9), %v1905_v9  ;;  %v1913_v20 = vpack.c.bf16 (!%p445_p9), %v535_v15, %v534_v14  ;;  %v1917_v52 = vpack.c.bf16 (!%p445_p9), %v537_v51, %v536_v50  ;;  %v1636_v53 = vld [vmem:[%s2626_s5] ss:$0 sm:$0xff] (!%p445_p9)  ;;  %vm2452_vm4 = vmpackc.low (!%p445_p9), %vm765_vm1, %vm765_vm1 }
  0x1b   : > { %1908 = vmatpush3.bf16.msra.mxu1 (!%p445_p9), %v1905_v9 }
  0x1c   : > { %v528_v0 = vld [vmem:[%s2651_s4] sm:$0xff] (!%p445_p9)  ;;  %v529_v1 = vld [vmem:[%s2651_s4 + $0x8] sm:$0xff] (!%p445_p9)  ;;  %1910 = vmatprep.subr.bf16.mxu1 (!%p445_p9), %v1909_v13 }
  0x1d   : > { %v1893_v3 = vpack.c.bf16 (!%p445_p9), %v529_v1, %v528_v0 }
  0x1e   : > { %s2316_s21 = scalar_select %p509_p10, %s2297_s20, 31 }
  0x1f   : > { %1894 = vmatprep.subr.bf16.mxu0 %v1893_v3  ;;  %1912 = vmatpush3.bf16.msra.mxu1 %v1909_v13  ;;  %s521_s22 = scalar_select %p520_p11, %s2261_s17, 1 }
  0x20   : > { %1896 = vmatpush3.bf16.msra.mxu0 %v1893_v3  ;;  %s1600_s4 = sshll.u32 %s2316_s21, 3  ;;  %1914 = vmatprep.subr.bf16.mxu1 %v1913_v20  ;;  %s2641_s21 = sshll.u32 %s2261_s17, 5 }
  0x21   : > { %1898 = vmatprep.subr.bf16.mxu0 %v1897_v5  ;;  %s2339_s24 = scalar_lea.vmem %s2652_s1, %s1600_s4  ;;  %s2374_s28 = scalar_lea.vmem %s2653_s0, %s1600_s4 }
  0x22   : > { %v555_v16 = vld [vmem:[%s2339_s24] sm:$0xff]  ;;  %v556_v17 = vld [vmem:[%s2339_s24 + $0x8] sm:$0xff]  ;;  %v557_v18 = vld [vmem:[%s2339_s24 + $0x10] sm:$0xff]  ;;  %s1603_s25 = sshll.u32 %s521_s22, 1  ;;  %s2038_s22 = sshll.u32 %s2162_s15, 4  ;;  %s2039_s22 = int_to_ptr.vmem [resolvable:$false] %s2038_s22 }
  0x23   : > { %1762 = vmatprep.mubr.msk.f32.mxu0 %vm571_vm0, %v555_v16  ;;  %v558_v21 = vld [vmem:[%s2339_s24 + $0x18] sm:$0xff]  ;;  %v559_v22 = vld [vmem:[%s2339_s24 + $0x20] sm:$0xff]  ;;  %v560_v23 = vld [vmem:[%s2339_s24 + $0x28] sm:$0xff]  ;;  %1916 = vmatpush3.bf16.msra.mxu1 %v1913_v20  ;;  %s523_s27 = scalar_lea.vmem %s2623_s2, %s1603_s25  ;;  %s2504_s25 = scalar_lea.hbm %s2633_s12, %s2641_s21 }
  0x24   : > { %1763 = vmatmul.mubr.msk.f32.vlgmr.msra.gmra.mrb[0].mxu0 %vm571_vm0, %v556_v17  ;;  %v561_v24 = vld [vmem:[%s2339_s24 + $0x30] sm:$0xff]  ;;  %v562_v25 = vld [vmem:[%s2339_s24 + $0x38] sm:$0xff]  ;;  %v563_v26 = vld [vmem:[%s2339_s24 + $0x40] sm:$0xff]  ;;  %1918 = vmatprep.subr.bf16.mxu1 %v1917_v52  ;;  %s2040_s21 = scalar_lea.vmem %s2039_s22, 64 }
  0x25   : > { %1900 = vmatpush3.bf16.msra.mxu0 %v1897_v5  ;;  %1765 = vmatprep.mubr.msk.f32.mxu0 %vm571_vm0, %v557_v18  ;;  %v564_v27 = vld [vmem:[%s2339_s24 + $0x48] sm:$0xff]  ;;  %v565_v28 = vld [vmem:[%s2339_s24 + $0x50] sm:$0xff]  ;;  %v566_v29 = vld [vmem:[%s2339_s24 + $0x58] sm:$0xff] }
  0x26   : > { %1902 = vmatprep.subr.bf16.mxu0 %v1901_v19  ;;  %v567_v30 = vld [vmem:[%s2339_s24 + $0x60] sm:$0xff]  ;;  %v568_v31 = vld [vmem:[%s2339_s24 + $0x68] sm:$0xff]  ;;  %v569_v32 = vld [vmem:[%s2339_s24 + $0x70] sm:$0xff] }
  0x27   : > { %v570_v33 = vld [vmem:[%s2339_s24 + $0x78] sm:$0xff]  ;;  %v539_v34 = vld [vmem:[%s2374_s28] sm:$0xff]  ;;  %v540_v35 = vld [vmem:[%s2374_s28 + $0x8] sm:$0xff]  ;;  %1920 = vmatpush3.bf16.msra.mxu1 %v1917_v52 }
  0x28   : > { %1766 = vmatmul.mubr.msk.f32.gmra.mrb[2].mxu0 %vm571_vm0, %v558_v21  ;;  %v541_v36 = vld [vmem:[%s2374_s28 + $0x10] sm:$0xff]  ;;  %v542_v37 = vld [vmem:[%s2374_s28 + $0x18] sm:$0xff]  ;;  %v543_v38 = vld [vmem:[%s2374_s28 + $0x20] sm:$0xff] }
  0x29   : > { %1768 = vmatprep.mubr.msk.f32.mxu0 %vm571_vm0, %v559_v22  ;;  %1904 = vmatpush3.bf16.msra.mxu0 %v1901_v19  ;;  %v544_v39 = vld [vmem:[%s2374_s28 + $0x28] sm:$0xff]  ;;  %v545_v40 = vld [vmem:[%s2374_s28 + $0x30] sm:$0xff]  ;;  %v546_v41 = vld [vmem:[%s2374_s28 + $0x38] sm:$0xff] }
  0x2a   : > { %v547_v42 = vld [vmem:[%s2374_s28 + $0x40] sm:$0xff]  ;;  %v548_v43 = vld [vmem:[%s2374_s28 + $0x48] sm:$0xff]  ;;  %v549_v44 = vld [vmem:[%s2374_s28 + $0x50] sm:$0xff] }
  0x2b   : > { %v550_v45 = vld [vmem:[%s2374_s28 + $0x58] sm:$0xff]  ;;  %v551_v46 = vld [vmem:[%s2374_s28 + $0x60] sm:$0xff]  ;;  %v552_v47 = vld [vmem:[%s2374_s28 + $0x68] sm:$0xff] }
  0x2c   : > { %1769 = vmatmul.mubr.msk.f32.gmra.mrb[4].mxu0 %vm571_vm0, %v560_v23  ;;  %v553_v48 = vld [vmem:[%s2374_s28 + $0x70] sm:$0xff]  ;;  %v554_v49 = vld [vmem:[%s2374_s28 + $0x78] sm:$0xff]  ;;  %s2495_s28 = sand.u32 1, %s2148_s30  }
  0x2d   : > { %1771 = vmatprep.mubr.msk.f32.mxu0 %vm571_vm0, %v561_v24  ;;  %s1597_s24 = sshll.u32 %s2495_s28, 1  ;;  %s1405_s19 = scalar_lea.sflag [#allocation3], %s2495_s28 }
  0x2e   : > { %s494_s4 = scalar_lea.vmem [#allocation2], %s1597_s24  ;;  %s2508_s26 = scalar_lea.vmem [#allocation6], %s1597_s24 }
  0x2f   : > { %s1427_s18 = sshll.u32 %s494_s4, 4  ;;  %s2506_s18 = int_to_ptr.vmem [resolvable:$true] %s1427_s18 }
  0x30   : > { %1772 = vmatmul.mubr.msk.f32.gmra.mrb[6].mxu0 %vm571_vm0, %v562_v25  ;;  %p2041_p1 = scmp.lt.s32.totalorder %s2506_s18, %s2039_s22 }
  0x31   : > { %1774 = vmatprep.mubr.msk.f32.mxu0 %vm571_vm0, %v563_v26 }
  0x34   : > { %1775 = vmatmul.mubr.msk.f32.gmra.mrb[8].mxu0 %vm571_vm0, %v564_v27 }
  0x35   : > { %1777 = vmatprep.mubr.msk.f32.mxu0 %vm571_vm0, %v565_v28 }
  0x38   : > { %1778 = vmatmul.mubr.msk.f32.gmra.mrb[10].mxu0 %vm571_vm0, %v566_v29 }
  0x39   : > { %1780 = vmatprep.mubr.msk.f32.mxu0 %vm571_vm0, %v567_v30 }
  0x3c   : > { %1781 = vmatmul.mubr.msk.f32.gmra.mrb[12].mxu0 %vm571_vm0, %v568_v31 }
  0x3d   : > { %1783 = vmatprep.mubr.msk.f32.mxu0 %vm571_vm0, %v569_v32 }
  0x40   : > { %1784 = vmatmul.mubr.msk.f32.gmra.mrb[14].mxu0 %vm571_vm0, %v570_v33 }
  0x41   : > { %1794 = vmatprep.mubr.msk.f32.mxu0 %vm765_vm1, %v539_v34 }
  0x44   : > { %1795 = vmatmul.mubr.msk.f32.vlgmr.msra.gmra.mrb[0].mxu0 %vm765_vm1, %v540_v35 }
  0x45   : > { %1797 = vmatprep.mubr.msk.f32.mxu0 %vm765_vm1, %v541_v36 }
  0x48   : > { %1798 = vmatmul.mubr.msk.f32.gmra.mrb[2].mxu0 %vm765_vm1, %v542_v37 }
  0x49   : > { %1800 = vmatprep.mubr.msk.f32.mxu0 %vm765_vm1, %v543_v38  ;;  %v2158_v38 = vmov 0.0|0.0  }
  0x4a   : > { %1921 = vmatprep.subr.bf16.mxu1 %v2158_v38 }
  0x4c   : > { %1801 = vmatmul.mubr.msk.f32.gmra.mrb[4].mxu0 %vm765_vm1, %v544_v39  ;;  %v2160_v39 = vmov 0.0  }
  0x4d   : > { %1803 = vmatprep.mubr.msk.f32.mxu0 %vm765_vm1, %v545_v40  ;;  %v1215_v40 = vld [vmem:[%s2630_s9] sm:$0xf] }
  0x50   : > { %1804 = vmatmul.mubr.msk.f32.gmra.mrb[6].mxu0 %vm765_vm1, %v546_v41  ;;  %v2161_v41 = vmov 0  }
  0x51   : > { %1806 = vmatprep.mubr.msk.f32.mxu0 %vm765_vm1, %v547_v42  ;;  %2022 = vset.pattern.permute.xlu0 %v2161_v41  ;;  %v1356_v42 = vld [vmem:[%s2631_s10] sm:$0x3] }
  0x52   : > { %2023 = vset.pattern.permute.xlu1 %v2161_v41  ;;  %1218 = vperm.xlu0 %2022, %v1215_v40  }
  0x53   : > { %1366 = vperm.xlu1 %2023, %v1356_v42  }
  0x54   : > { %1807 = vmatmul.mubr.msk.f32.gmra.mrb[8].mxu0 %vm765_vm1, %v548_v43  ;;  %v1357_v43 = vld [vmem:[%s2632_s11] sm:$0x3] }
  0x55   : > { %1809 = vmatprep.mubr.msk.f32.mxu0 %vm765_vm1, %v549_v44  ;;  %v1637_v44 = vld [vmem:[%s2628_s7] ss:$0 sm:$0xff] }
  0x56   : > { %1360 = vperm.xlu0 %2022, %v1357_v43  }
  0x58   : > { %1810 = vmatmul.mubr.msk.f32.gmra.mrb[10].mxu0 %vm765_vm1, %v550_v45 }
  0x59   : > { %1812 = vmatprep.mubr.msk.f32.mxu0 %vm765_vm1, %v551_v46 }
  0x5c   : > { %1813 = vmatmul.mubr.msk.f32.gmra.mrb[12].mxu0 %vm765_vm1, %v552_v47 }
  0x5d   : > { %1815 = vmatprep.mubr.msk.f32.mxu0 %vm765_vm1, %v553_v48 }
  0x60   : > { %1816 = vmatmul.mubr.msk.f32.gmra.mrb[14].mxu0 %vm765_vm1, %v554_v49 }
  0xd1   : > { %v1219_v40 = vpop.permute.xlu0 %1218 }
 0x117   : > { %v1796_v54 = vpop.f32.mrb[0].mxu0 }
 0x118   : > { %v967_v55 = vadd.f32 %v1796_v54, %v1636_v53  ;;  %v880_v56 = vpop.f32.mrb[1].mxu0 }
 0x119   : > { %v966_v57 = vadd.f32 %v1636_v53, %v880_v56 }
 0x11a   : > { %v983_v60 = vmax.f32 %v967_v55, 0.0 }
 0x11b   : > { %v982_v58 = vmax.f32 %v966_v57, 0.0  ;;  %v1799_v59 = vpop.f32.mrb[2].mxu0 }
 0x11c   : > { %v969_v61 = vadd.f32 %v1799_v59, %v1636_v53  ;;  %v890_v62 = vpop.f32.mrb[3].mxu0 }
 0x11d   : > { %v968_v63 = vadd.f32 %v1636_v53, %v890_v62  ;;  %1834 = vmatprep.mubr.msk.f32.mxu1 %vm1005_vm2, %v982_v58 }
 0x11e   : > { %1835 = vmatmul.mubr.msk.f32.vlgmr.msra.gmra.mrb[0].mxu1 %vm1005_vm2, %v983_v60  ;;  %v985_v2 = vmax.f32 %v969_v61, 0.0 }
 0x11f   : > { %v984_v0 = vmax.f32 %v968_v63, 0.0  ;;  %v1802_v1 = vpop.f32.mrb[4].mxu0 }
 0x120   : > { %v971_v3 = vadd.f32 %v1802_v1, %v1636_v53  ;;  %v900_v4 = vpop.f32.mrb[5].mxu0 }
 0x121   : > { %v970_v5 = vadd.f32 %v1636_v53, %v900_v4  ;;  %1837 = vmatprep.mubr.msk.f32.mxu1 %vm1005_vm2, %v984_v0 }
 0x122   : > { %1838 = vmatmul.mubr.msk.f32.gmra.mrb[2].mxu1 %vm1005_vm2, %v985_v2  ;;  %v987_v8 = vmax.f32 %v971_v3, 0.0 }
 0x123   : > { %v986_v6 = vmax.f32 %v970_v5, 0.0  ;;  %v1805_v7 = vpop.f32.mrb[6].mxu0 }
 0x124   : > { %v973_v9 = vadd.f32 %v1805_v7, %v1636_v53  ;;  %v910_v10 = vpop.f32.mrb[7].mxu0 }
 0x125   : > { %v972_v11 = vadd.f32 %v1636_v53, %v910_v10  ;;  %1840 = vmatprep.mubr.msk.f32.mxu1 %vm1005_vm2, %v986_v6 }
 0x126   : > { %1841 = vmatmul.mubr.msk.f32.gmra.mrb[4].mxu1 %vm1005_vm2, %v987_v8  ;;  %v989_v14 = vmax.f32 %v973_v9, 0.0 }
 0x127   : > { %v988_v12 = vmax.f32 %v972_v11, 0.0  ;;  %v1808_v13 = vpop.f32.mrb[8].mxu0 }
 0x128   : > { %v975_v15 = vadd.f32 %v1808_v13, %v1636_v53  ;;  %v920_v16 = vpop.f32.mrb[9].mxu0 }
 0x129   : > { %v974_v17 = vadd.f32 %v1636_v53, %v920_v16  ;;  %1843 = vmatprep.mubr.msk.f32.mxu1 %vm1005_vm2, %v988_v12 }
 0x12a   : > { %1844 = vmatmul.mubr.msk.f32.gmra.mrb[6].mxu1 %vm1005_vm2, %v989_v14  ;;  %v991_v20 = vmax.f32 %v975_v15, 0.0 }
 0x12b   : > { %v990_v18 = vmax.f32 %v974_v17, 0.0  ;;  %v1811_v19 = vpop.f32.mrb[10].mxu0 }
 0x12c   : > { %v977_v21 = vadd.f32 %v1811_v19, %v1636_v53  ;;  %v930_v22 = vpop.f32.mrb[11].mxu0 }
 0x12d   : > { %v976_v23 = vadd.f32 %v1636_v53, %v930_v22  ;;  %1846 = vmatprep.mubr.msk.f32.mxu1 %vm1005_vm2, %v990_v18 }
 0x12e   : > { %1847 = vmatmul.mubr.msk.f32.gmra.mrb[8].mxu1 %vm1005_vm2, %v991_v20  ;;  %v993_v26 = vmax.f32 %v977_v21, 0.0 }
 0x12f   : > { %v992_v24 = vmax.f32 %v976_v23, 0.0  ;;  %v1814_v25 = vpop.f32.mrb[12].mxu0 }
 0x130   : > { %v979_v27 = vadd.f32 %v1814_v25, %v1636_v53  ;;  %v940_v28 = vpop.f32.mrb[13].mxu0 }
 0x131   : > { %v978_v29 = vadd.f32 %v1636_v53, %v940_v28  ;;  %1849 = vmatprep.mubr.msk.f32.mxu1 %vm1005_vm2, %v992_v24 }
 0x132   : > { %1850 = vmatmul.mubr.msk.f32.gmra.mrb[10].mxu1 %vm1005_vm2, %v993_v26  ;;  %v995_v32 = vmax.f32 %v979_v27, 0.0 }
 0x133   : > { %v994_v30 = vmax.f32 %v978_v29, 0.0  ;;  %v1817_v31 = vpop.f32.mrb[14].mxu0 }
 0x134   : > { %v981_v33 = vadd.f32 %v1817_v31, %v1636_v53  ;;  %v950_v34 = vpop.f32.mrb[15].mxu0 }
 0x135   : > { %v980_v35 = vadd.f32 %v1636_v53, %v950_v34  ;;  %1852 = vmatprep.mubr.msk.f32.mxu1 %vm1005_vm2, %v994_v30 }
 0x136   : > { %1853 = vmatmul.mubr.msk.f32.gmra.mrb[12].mxu1 %vm1005_vm2, %v995_v32  ;;  %v997_v37 = vmax.f32 %v981_v33, 0.0 }
 0x137   : > { %v996_v36 = vmax.f32 %v980_v35, 0.0 }
 0x139   : > { %1855 = vmatprep.mubr.msk.f32.mxu1 %vm1005_vm2, %v996_v36 }
 0x13a   : > { %1856 = vmatmul.mubr.msk.f32.gmra.mrb[14].mxu1 %vm1005_vm2, %v997_v37 }
 0x13b   : > { %1890 = vmatprep.mubr.msk.f32.mxu1 %vm2159_vm3, %v2160_v39  ;;  %v538_v39 = vld [vmem:[%s2629_s8] sm:$0xf] }
 0x1f1   : > { %v1836_v45 = vpop.f32.mrb[0].mxu1 }
 0x1f2   : > { %v1126_v46 = vadd.f32 %v1836_v45, %v1637_v44  ;;  %v1120_v47 = vpop.f32.mrb[1].mxu1 }
 0x1f3   : > { %v1121_v48 = vadd.f32 %v1637_v44, %v1120_v47 }
 0x1f4   : > { %v1200_v49 = vmax.f32 %v1126_v46, 0.0  ;;  %v2491_v46 = vld [vmem:[%s523_s27] sm:$0x3]  ;;  %s2034_s27 = scalar_lea.vmem %s2506_s18, 32 }
 0x1f5   : > { %v1199_v50 = vmax.f32 %v1121_v48, 0.0  ;;  %v1839_v51 = vpop.f32.mrb[2].mxu1  ;;  %v1348_v47 = vrot.slane %v2491_v46, 6  ;;  %p2035_p12 = scmp.ne.s32.totalorder %s2506_s18, %s2034_s27  ;;  %p2042_p2 = scmp.lt.s32.totalorder %s2040_s21, %s2034_s27 }
 0x1f6   : > { %v1136_v52 = vadd.f32 %v1839_v51, %v1637_v44  ;;  %v1130_v53 = vpop.f32.mrb[3].mxu1 }
 0x1f7   : > { %v1922_v55 = vpack.c.bf16 %v1200_v49, %v1199_v50  ;;  %v1131_v56 = vadd.f32 %v1637_v44, %v1130_v53  ;;  %p2036_p13 = pnand %p2035_p12, %p2280_p5  ;;  %p2043_p3 = por %p2042_p2, %p2041_p1 }
 0x1f8   : > { %v1202_v57 = vmax.f32 %v1136_v52, 0.0 }
 0x1f9   : > { %v1201_v58 = vmax.f32 %v1131_v56, 0.0  ;;  %v1842_v59 = vpop.f32.mrb[4].mxu1  ;;  %1924 = vmatpush3.bf16.xpose.msk.msra.mxu1 %vm2452_vm4, %v1922_v55  ;;  %p2037_p0 = pneg %p2036_p13 }
 0x1fa   : > { %v1146_v60 = vadd.f32 %v1842_v59, %v1637_v44  ;;  %v1140_v61 = vpop.f32.mrb[5].mxu1  ;;  %1925 = vmatprep.subr.bf16.mxu1 %v2158_v38  ;;  %v1367_v59 = vpop.permute.xlu1 %1366 }
 0x1fb   : > { %v1926_v62 = vpack.c.bf16 %v1202_v57, %v1201_v58  ;;  %v1141_v63 = vadd.f32 %v1637_v44, %v1140_v61  ;;  %v1361_v58 = vpop.permute.xlu0 %1360  ;;  %p2044_p4 = pnand %p2043_p3, %p2037_p0 }
 0x1fc   : > { %v1204_v0 = vmax.f32 %v1146_v60, 0.0 }
 0x1fd   : > { %v1203_v1 = vmax.f32 %v1141_v63, 0.0  ;;  %v1845_v2 = vpop.f32.mrb[6].mxu1 }
 0x1fe   : > { %v1156_v3 = vadd.f32 %v1845_v2, %v1637_v44  ;;  %v1150_v4 = vpop.f32.mrb[7].mxu1 }
 0x1ff   : > { %v1930_v5 = vpack.c.bf16 %v1204_v0, %v1203_v1  ;;  %v1151_v6 = vadd.f32 %v1637_v44, %v1150_v4 }
 0x200   : > { %v1206_v7 = vmax.f32 %v1156_v3, 0.0 }
 0x201   : > { %v1205_v8 = vmax.f32 %v1151_v6, 0.0  ;;  %v1848_v9 = vpop.f32.mrb[8].mxu1  ;;  %1928 = vmatpush3.bf16.xpose.msk.msra.mxu1 %vm2452_vm4, %v1926_v62 }
 0x202   : > { %v1166_v10 = vadd.f32 %v1848_v9, %v1637_v44  ;;  %v1160_v11 = vpop.f32.mrb[9].mxu1  ;;  %1929 = vmatprep.subr.bf16.mxu1 %v2158_v38 }
 0x203   : > { %v1934_v12 = vpack.c.bf16 %v1206_v7, %v1205_v8  ;;  %v1161_v13 = vadd.f32 %v1637_v44, %v1160_v11 }
 0x204   : > { %v1208_v14 = vmax.f32 %v1166_v10, 0.0 }
 0x205   : > { %v1207_v15 = vmax.f32 %v1161_v13, 0.0  ;;  %v1851_v16 = vpop.f32.mrb[10].mxu1 }
 0x206   : > { %v1176_v17 = vadd.f32 %v1851_v16, %v1637_v44  ;;  %v1170_v18 = vpop.f32.mrb[11].mxu1 }
 0x207   : > { %v1938_v19 = vpack.c.bf16 %v1208_v14, %v1207_v15  ;;  %v1171_v20 = vadd.f32 %v1637_v44, %v1170_v18 }
 0x208   : > { %v1210_v21 = vmax.f32 %v1176_v17, 0.0 }
 0x209   : > { %v1209_v22 = vmax.f32 %v1171_v20, 0.0  ;;  %v1854_v23 = vpop.f32.mrb[12].mxu1  ;;  %1932 = vmatpush3.bf16.xpose.msk.msra.mxu1 %vm2452_vm4, %v1930_v5 }
 0x20a   : > { %v1186_v24 = vadd.f32 %v1854_v23, %v1637_v44  ;;  %v1180_v25 = vpop.f32.mrb[13].mxu1  ;;  %1933 = vmatprep.subr.bf16.mxu1 %v2158_v38 }
 0x20b   : > { %v1942_v26 = vpack.c.bf16 %v1210_v21, %v1209_v22  ;;  %v1181_v27 = vadd.f32 %v1637_v44, %v1180_v25 }
 0x20c   : > { %v1212_v28 = vmax.f32 %v1186_v24, 0.0 }
 0x20d   : > { %v1211_v29 = vmax.f32 %v1181_v27, 0.0  ;;  %v1857_v30 = vpop.f32.mrb[14].mxu1 }
 0x20e   : > { %v1196_v31 = vadd.f32 %v1857_v30, %v1637_v44  ;;  %v1190_v32 = vpop.f32.mrb[15].mxu1 }
 0x20f   : > { %v1946_v33 = vpack.c.bf16 %v1212_v28, %v1211_v29  ;;  %v1191_v34 = vadd.f32 %v1637_v44, %v1190_v32 }
 0x210   : > { %v1214_v35 = vmax.f32 %v1196_v31, 0.0 }
 0x211   : > { %v1213_v36 = vmax.f32 %v1191_v34, 0.0  ;;  %1936 = vmatpush3.bf16.xpose.msk.msra.mxu1 %vm2452_vm4, %v1934_v12 }
 0x212   : > { %1937 = vmatprep.subr.bf16.mxu1 %v2158_v38 }
 0x213   : > { %v1950_v37 = vpack.c.bf16 %v1214_v35, %v1213_v36 }
 0x219   : > { %1940 = vmatpush3.bf16.xpose.msk.msra.mxu1 %vm2452_vm4, %v1938_v19 }
 0x21a   : > { %1941 = vmatprep.subr.bf16.mxu1 %v2158_v38 }
 0x221   : > { %1944 = vmatpush3.bf16.xpose.msk.msra.mxu1 %vm2452_vm4, %v1942_v26 }
 0x222   : > { %1945 = vmatprep.subr.bf16.mxu1 %v2158_v38 }
 0x229   : > { %1948 = vmatpush3.bf16.xpose.msk.msra.mxu1 %vm2452_vm4, %v1946_v33 }
 0x22a   : > { %1949 = vmatprep.subr.bf16.mxu1 %v2158_v38 }
 0x231   : > { %1952 = vmatpush3.bf16.xpose.msk.msra.mxu1 %vm2452_vm4, %v1950_v37 }
 0x238   : > { %1891 = vmatmul.mubr.msk.f32.vlgmr.msra.gmra.mrb[16].mxu1 %vm765_vm1, %v538_v39 }
 0x30b   : > { %v1338_v41 = vpop.f32.mrb[16].mxu1 }
 0x30c   : > { %v1339_v42 = vadd.f32 %v1338_v41, %v1219_v40  ;;  %v1892_v43 = vpop.f32.mrb[17].mxu1 }
 0x30e   : > { %v1342_v44 = vmax.f32 %v1339_v42, -5.0 }
 0x310   : > { %v2485_v45 = vmin.f32 %v1342_v44, 2.0 }
 0x312   : > { %v1344_v38 = vmul.f32 1.442695, %v2485_v45 }
 0x314   : > { %2024 = vpow2.f32 %v1344_v38 }
 0x31e   : > { %v2025_v48 = vpop.eup %2024 }
 0x31f   : > { %v1350_v49 = vmul.f32 %v2025_v48, %v1348_v47  ;;  %v1395_v50 = vrot.slane %v2025_v48, 2 }
 0x321   : > { %v1352_v51 = vrot.slane %v1350_v49, 2  ;;  %v1397_v52 = vadd.f32 %v1395_v50, %v1339_v42  ;;  %v1399_v53 = vsub.f32 %v1339_v42, %v1395_v50 }
 0x323   : > { %v1354_v54 = vadd.f32 %v1352_v51, %v1339_v42  ;;  %2026 = vtanh.f32 %v1397_v52 }
 0x324   : > { %2028 = vtanh.f32 %v1399_v53 }
 0x325   : > { %2030 = vtanh.f32 %v1354_v54 }
 0x32d   : > { %v2027_v55 = vpop.eup %2026 }
 0x32e   : > { %v2029_v56 = vpop.eup %2028 }
 0x32f   : > { %v2031_v57 = vpop.eup %2030  ;;  %v1401_v60 = vsub.f32 %v2027_v55, %v2029_v56 }
 0x330   : > { %v1378_v61 = vmul.f32 %v2031_v57, %v2031_v57  ;;  %v1363_v62 = vmul.f32 %v2031_v57, %v1361_v58 }
 0x331   : > { %v1402_v63 = vmul.f32 0.5, %v1401_v60 }
 0x332   : > { %v1369_v0 = vadd.f32 %v1367_v59, %v1363_v62  ;;  %v1379_v1 = vsub.f32 1.0, %v1378_v61 }
 0x333   : > { %1403 = vst [vmem:[%s2508_s26] sm:$0x3] %v1402_v63 }
 0x334   : > { %1370 = vst [vmem:[%s494_s4] sm:$0x3] %v1369_v0  ;;  %v1380_v2 = vmul.f32 %v1379_v1, %v1361_v58 }
 0x335   : > { %2047 = shalt.err (!%p2044_p4)
}
 0x336   : > { %s2048_s24 = scalar_lea.hbm %s2504_s25, 32  ;;  %s2052_s15 = scalar_lea.hbm %s2633_s12, 64 }
 0x337   : > { %p2049_p7 = scmp.ne.s32.totalorder %s2504_s25, %s2048_s24  ;;  %p2053_p10 = scmp.lt.u32.totalorder %s2504_s25, %s2633_s12 }
 0x338   : > { %p2054_p11 = scmp.lt.u32.totalorder %s2052_s15, %s2048_s24  ;;  %p2056_p13 = scmp.lt.u32.totalorder %s2048_s24, %s2504_s25 }
 0x339   : > { %p2050_p8 = pnand %p2049_p7, %p2280_p5 }
 0x33a   : > { %p2055_p12 = por %p2054_p11, %p2053_p10 }
 0x33b   : > { %p2051_p9 = pneg %p2050_p8 }
 0x33c   : > { %p2057_p0 = por %p2056_p13, %p2055_p12 }
 0x33e   : > { %p2058_p1 = pnand %p2057_p0, %p2051_p9 }
 0x340   : > { %2061 = shalt.err (!%p2058_p1)
}
 0x341   : > { %1969 = dma.vmem_to_hbm [thread:$0]  (%p2280_p5), %s2506_s18, 32, %s2504_s25, %s1405_s19   ;;  %v1381_v3 = vadd.f32 1e-06, %v1380_v2  ;;  %v1371_v4 = vmul.f32 -0.5, %v2491_v46  ;;  %v1374_v6 = vrot.slane %v2485_v45, 2  ;;  %vm1385_vm5 = vcmask 1041408  }
 0x342   : > { %s1409_s0 = sand.u32 1, %s2261_s17   ;;  %s500_s1 = scalar_lea.vmem [#allocation4], %s2495_s28 }
 0x343   : > { %2032 = vlog2.f32 %v1381_v3  ;;  %v1372_v5 = vmul.f32 %v1371_v4, %v2491_v46  ;;  %s1440_s21 = sshll.u32 %s500_s1, 4  ;;  %s1453_s18 = sshll.u32 %s2508_s26, 4  ;;  %s2545_s21 = int_to_ptr.vmem [resolvable:$true] %s1440_s21  ;;  %s2554_s18 = int_to_ptr.vmem [resolvable:$true] %s1453_s18 }
 0x344   : > { %s2543_s27 = scalar_lea.hbm %s2634_s13, %s2297_s20  ;;  %s2656_s24 = sshll.u32 %s2261_s17, 5 }
 0x345   : > { %v1376_v7 = vsub.f32 %v1372_v5, %v1374_v6  ;;  %s2552_s22 = scalar_lea.hbm %s2635_s14, %s2656_s24  ;;  %s2556_s28 = scalar_lea.sflag [#allocation5], %s1409_s0 }
 0x346   : > { %s2062_s26 = scalar_lea.vmem %s2545_s21, 16  ;;  %s2163_s20 = smov [#allocation4]  }
 0x347   : > { %v1671_v9 = vadd.f32 -0.9189385, %v1376_v7  ;;  %p2063_p2 = scmp.ne.s32.totalorder %s2545_s21, %s2062_s26  ;;  %s2066_s17 = sshll.u32 %s2163_s20, 4  ;;  %s2067_s17 = int_to_ptr.vmem [resolvable:$false] %s2066_s17 }
 0x348   : > { %s2068_s25 = scalar_lea.vmem %s2067_s17, 32  ;;  %p2069_p7 = scmp.lt.s32.totalorder %s2545_s21, %s2067_s17 }
 0x349   : > { %p2064_p3 = pnand %p2063_p2, %p2280_p5  ;;  %p2070_p8 = scmp.lt.s32.totalorder %s2068_s25, %s2062_s26 }
 0x34b   : > { %p2065_p4 = pneg %p2064_p3  ;;  %p2071_p9 = por %p2070_p8, %p2069_p7 }
 0x34d   : > { %v2033_v8 = vpop.eup %2032  ;;  %p2072_p10 = pnand %p2071_p9, %p2065_p4 }
 0x34e   : > { %v1383_v10 = vmul.f32 0.6931472, %v2033_v8 }
 0x350   : > { %v1384_v11 = vsub.f32 %v1671_v9, %v1383_v10 }
 0x352   : > { %v1386_v12 = vsel %vm1385_vm5, %v1384_v11, 0.0 }
 0x353   : > { %v1387_v13 = vrot.slane %v1386_v12, 4 }
 0x355   : > { %v1388_v14 = vadd.f32 %v1387_v13, %v1386_v12 }
 0x357   : > { %v1389_v15 = vrot.slane %v1388_v14, 2 }
 0x359   : > { %v1390_v16 = vadd.f32 %v1389_v15, %v1388_v14 }
 0x35b   : > { %v1391_v17 = vrot.slane %v1390_v16, 1 }
 0x35d   : > { %v1392_v18 = vadd.f32 %v1391_v17, %v1390_v16 }
 0x35f   : > { %1393 = vst [vmem:[%s500_s1] sm:$0x1] %v1392_v18 }
 0x360   : > { %2075 = shalt.err (!%p2072_p10)
}
 0x361   : > { %s2076_s0 = scalar_lea.hbm %s2543_s27, 16  ;;  %s2080_s24 = scalar_lea.hbm %s2634_s13, 32 }
 0x362   : > { %p2077_p11 = scmp.ne.s32.totalorder %s2543_s27, %s2076_s0  ;;  %p2081_p0 = scmp.lt.u32.totalorder %s2543_s27, %s2634_s13 }
 0x363   : > { %p2082_p1 = scmp.lt.u32.totalorder %s2080_s24, %s2076_s0  ;;  %p2084_p3 = scmp.lt.u32.totalorder %s2076_s0, %s2543_s27 }
 0x364   : > { %p2078_p12 = pnand %p2077_p11, %p2280_p5 }
 0x365   : > { %p2083_p2 = por %p2082_p1, %p2081_p0 }
 0x366   : > { %p2079_p13 = pneg %p2078_p12 }
 0x367   : > { %p2085_p4 = por %p2084_p3, %p2083_p2 }
 0x369   : > { %p2086_p7 = pnand %p2085_p4, %p2079_p13 }
 0x36b   : > { %2089 = shalt.err (!%p2086_p7)
}
 0x36c   : > { %1970 = dma.vmem_to_hbm [thread:$0]  (%p2280_p5), %s2545_s21, 16, %s2543_s27, %s2556_s28  }
 0x36d   : > { %s2090_s26 = scalar_lea.vmem %s2554_s18, 32  ;;  %s2164_s20 = smov [#allocation6]  }
 0x36e   : > { %p2091_p8 = scmp.ne.s32.totalorder %s2554_s18, %s2090_s26  ;;  %s2094_s17 = sshll.u32 %s2164_s20, 4  ;;  %s2095_s17 = int_to_ptr.vmem [resolvable:$false] %s2094_s17 }
 0x36f   : > { %s2096_s25 = scalar_lea.vmem %s2095_s17, 64  ;;  %p2097_p11 = scmp.lt.s32.totalorder %s2554_s18, %s2095_s17 }
 0x370   : > { %p2092_p9 = pnand %p2091_p8, %p2280_p5  ;;  %p2098_p12 = scmp.lt.s32.totalorder %s2096_s25, %s2090_s26 }
 0x372   : > { %p2093_p10 = pneg %p2092_p9  ;;  %p2099_p13 = por %p2098_p12, %p2097_p11 }
 0x374   : > { %p2100_p0 = pnand %p2099_p13, %p2093_p10 }
 0x376   : > { %2103 = shalt.err (!%p2100_p0)
}
 0x377   : > { %s2104_s21 = scalar_lea.hbm %s2552_s22, 32  ;;  %s2108_s1 = scalar_lea.hbm %s2635_s14, 64 }
 0x378   : > { %p2105_p1 = scmp.ne.s32.totalorder %s2552_s22, %s2104_s21  ;;  %p2109_p4 = scmp.lt.u32.totalorder %s2552_s22, %s2635_s14 }
 0x379   : > { %p2110_p7 = scmp.lt.u32.totalorder %s2108_s1, %s2104_s21  ;;  %p2112_p9 = scmp.lt.u32.totalorder %s2104_s21, %s2552_s22 }
 0x37a   : > { %p2106_p2 = pnand %p2105_p1, %p2280_p5 }
 0x37b   : > { %p2111_p8 = por %p2110_p7, %p2109_p4 }
 0x37c   : > { %p2107_p3 = pneg %p2106_p2 }
 0x37d   : > { %p2113_p10 = por %p2112_p9, %p2111_p8 }
 0x37f   : > { %p2114_p11 = pnand %p2113_p10, %p2107_p3 }
 0x381   : > { %2117 = shalt.err (!%p2114_p11)
}
 0x382   : > { %1971 = dma.vmem_to_hbm [thread:$0]  (%p2280_p5), %s2554_s18, 32, %s2552_s22, %s2556_s28  }
 0x383 PF: > { %p1985_p12 = scmp.ge.s32.totalorder %s2156_s16, 2  ;;  %s1465_s15 = sand.u32 1, %s2144_s29  }
 0x384   : > { %s1466_s26 = scalar_lea.sflag [#allocation3], %s1465_s15 }
 0x385   : > { %p1976_p13 = pnand %p1985_p12, %p2284_p6 }
 0x387   : > { %2135 = dma.done.wait (!%p1976_p13), %s1466_s26, 32  }
 0x388   : > { %2137 = vsyncadd (!%p1976_p13), %s1466_s26, 4294967264  ;;  %s2658_s20 = sadd.s32 4294967294, %s2156_s16  }
 0x389   : > { %s1474_s17 = sand.u32 1, %s2658_s20  }
 0x38a   : > { %s1475_s25 = scalar_lea.sflag [#allocation5], %s1474_s17 }
 0x38b   : > { %2139 = dma.done.wait (!%p1976_p13), %s1475_s25, 48  }
 0x38c   : > { %2141 = vsyncadd (!%p1976_p13), %s1475_s25, 4294967248  ;;  %s2659_s16 = sld [smem:[#allocation10_spill]]  ;;  %s2660_s23 = sld [smem:[#allocation9_spill]] }
 0x38d   : > { %s2661_s15 = sld [smem:[#allocation11_spill]]  ;;  %s2662_s29 = smov %s2148_s30 }
 0x392   : > { %p28_p5 = scmp.ge.s32.totalorder %s2659_s16, 4   ;;  %s2663_s30 = smov %s2660_s23 }
 0x394   :  { %30 = sbr.rel (!%p28_p5) target bundleno = 9 (0x9), region = 141 }
 0x39b   :  { %1488 = vsyncpa [#allocation3], 1 }
 0x39c   :  { %1490 = vsyncpa [#allocation3 + $0x1], 1 }
 0x39d   :  { %1491 = vsyncpa [#allocation5], 1 }
 0x39e   :  { %1493 = vsyncpa [#allocation5 + $0x1], 1 }

</bundles_post_ra>
